<compile_context>
chip_gen: v7x
topology: tpu7x:2x2x1
jax: 0.10.0
libtpu: 0.0.40
codegen_flags: <defaults>
</compile_context>

<pallas_src>
import math
import functools

import jax
import jax.numpy as jnp
from jax.experimental import pallas as pl
from jax.experimental.pallas import tpu as pltpu


# ---------------------------------------------------------------------------
# Kernel 1: fused Q/K/V projections, tiled over (batch, L-tile).
# Reads raw-layout (1, H, TL) input blocks, writes head-major
# (1, n_heads, TL, hd) blocks.
# ---------------------------------------------------------------------------
def _qkv_proj_kernel(xq_ref, xk_ref, xv_ref,
                     wq_ref, bq_ref, wk_ref, bk_ref, wv_ref, bv_ref,
                     q_ref, k_ref, v_ref, *, n_heads, head_dim):
    cdt = wq_ref.dtype   # compute dtype (bf16 by default)

    def proj(x_ref, w_ref, b_ref, o_ref):
        x = x_ref[0].astype(cdt)                       # (H, TL)
        # y[l, o] = sum_h x[h, l] * w[h, o]  -> single full-width MXU matmul.
        y = jax.lax.dot_general(
            x, w_ref[...],
            dimension_numbers=(((0,), (0,)), ((), ())),
            preferred_element_type=jnp.float32)        # (TL, H) f32
        y = (y + b_ref[...]).astype(o_ref.dtype)       # bias in f32, store bf16
        # Head split via static lane-slice stores (no in-kernel reshape/transpose,
        # no extra HBM pass in the wrapper).
        for h in range(n_heads):
            o_ref[0, h] = y[:, h * head_dim:(h + 1) * head_dim]

    proj(xq_ref, wq_ref, bq_ref, q_ref)
    proj(xk_ref, wk_ref, bk_ref, k_ref)
    proj(xv_ref, wv_ref, bv_ref, v_ref)


# ---------------------------------------------------------------------------
# Kernel 2: flash attention (online softmax) + fused output projection.
# ---------------------------------------------------------------------------
def _flash_attn_kernel(q_ref, k_ref, v_ref, wf_ref, bf_ref, o_ref,
                       m_sc, l_sc, acc_sc, ctx_sc, *, n_heads, head_dim):
    """q_ref: (1, n_heads, TQ, hd)  (attention scale folded into Q projection)
    k_ref/v_ref: (1, n_heads, TK, hd)
    wf_ref: (H, H) in original (out, in) layout, bf_ref: (H, 1)
    o_ref: (1, H, TQ)   (raw-layout output block, no wrapper transpose)
    scratch: m_sc/l_sc (n_heads, TQ, 1) f32, acc_sc (n_heads, TQ, hd) f32,
             ctx_sc (TQ, H) f32 (head-packed context for the wide projection)."""
    ki = pl.program_id(2)

    @pl.when(ki == 0)
    def _init():
        m_sc[...] = jnp.full_like(m_sc, -jnp.inf)
        l_sc[...] = jnp.zeros_like(l_sc)
        acc_sc[...] = jnp.zeros_like(acc_sc)

    qh = q_ref[0]   # (h, TQ, d)
    kh = k_ref[0]   # (h, TK, d)
    vh = v_ref[0]   # (h, TK, d)

    # Scores: contract last dims directly (batched MXU matmul, no explicit K.T).
    s = jnp.einsum("hqd,hkd->hqk", qh, kh,
                   preferred_element_type=jnp.float32)        # (h, TQ, TK) f32

    m_prev = m_sc[...]
    m_new = jnp.maximum(m_prev, jnp.max(s, axis=-1, keepdims=True))
    alpha = jnp.exp(m_prev - m_new)
    p = jnp.exp(s - m_new)
    # TODO(synk): no mask path (module default mask=None) and no training-mode
    # dropout on `p` (identity in eval mode).
    l_sc[...] = alpha * l_sc[...] + jnp.sum(p, axis=-1, keepdims=True)
    acc_sc[...] = alpha * acc_sc[...] + jnp.einsum(
        "hqk,hkd->hqd", p.astype(vh.dtype), vh,
        preferred_element_type=jnp.float32)
    m_sc[...] = m_new

    @pl.when(ki == pl.num_programs(2) - 1)
    def _finalize():
        inv_l = pl.reciprocal(l_sc[...], approx=True)          # (h, TQ, 1)
        ctx = acc_sc[...] * inv_l                              # (h, TQ, d) f32
        # Pack heads into a lane-dense (TQ, H) buffer (static lane-slice stores),
        # then run ONE wide output projection with K = H.
        for h in range(n_heads):
            ctx_sc[:, h * head_dim:(h + 1) * head_dim] = ctx[h]
        # y^T = Wf (out,in) @ ctx^T  -> (H, TQ), written straight to (B, H, L).
        y_t = jax.lax.dot_general(
            wf_ref[...], ctx_sc[...].astype(wf_ref.dtype),
            dimension_numbers=(((1,), (1,)), ((), ())),
            preferred_element_type=jnp.float32)                # (H, TQ) f32
        y_t = y_t + bf_ref[...]                                # bias (H, 1)
        o_ref[0] = y_t.astype(o_ref.dtype)


# ---------------------------------------------------------------------------
# Parameter preparation (done once, outside the per-call path).
# ---------------------------------------------------------------------------
def prepare_params(params, n_heads, compute_dtype=jnp.bfloat16):
    """Convert PyTorch-layout (out,in) Linear params to kernel layout, fold the
    1/sqrt(head_dim) attention scale into the Q projection, and cast the weights
    to the MXU compute dtype (biases stay f32 and are added post-matmul)."""
    wq = jnp.asarray(params["wq"], jnp.float32)
    H = wq.shape[0]
    assert H % n_heads == 0
    hd = H // n_heads
    inv_scale = 1.0 / math.sqrt(hd)
    return {
        # y = x @ w_t + b layouts for the Q/K/V projections.
        "wq_t": (wq.T * inv_scale).astype(compute_dtype),
        "bq": (jnp.asarray(params["bq"], jnp.float32) * inv_scale).reshape(1, H),
        "wk_t": jnp.asarray(params["wk"], jnp.float32).T.astype(compute_dtype),
        "bk": jnp.asarray(params["bk"], jnp.float32).reshape(1, H),
        "wv_t": jnp.asarray(params["wv"], jnp.float32).T.astype(compute_dtype),
        "bv": jnp.asarray(params["bv"], jnp.float32).reshape(1, H),
        # fc kept in original (out, in) layout: kernel 2 computes y^T = wf @ ctx^T.
        "wf": jnp.asarray(params["wf"], jnp.float32).astype(compute_dtype),
        "bf_col": jnp.asarray(params["bf"], jnp.float32).reshape(H, 1),
    }


def _chip_budgets():
    """Per-chip (vmem_limit_bytes, tile_target). Conservative fallback if the
    hardware query is unavailable."""
    try:
        cap = int(pltpu.get_tpu_info().vmem_capacity_bytes)
    except Exception:
        cap = 64 * 1024 * 1024                      # assume the smallest (v7x-sized) VMEM
    if cap <= 64 * 1024 * 1024:                     # v7x-class: less VMEM, more HBM BW
        return 48 * 1024 * 1024, 256
    return 96 * 1024 * 1024, 512                    # v5e / v6e: bigger tiles pay off


def _pick_tile(n, target, mult=128):
    """Largest divisor of n that is <= target and a multiple of `mult` (lane
    density / (8,128) constraint); else n (full-extent block)."""
    if n <= target:
        return n
    best = 0
    for t in range(mult, target + 1, mult):
        if n % t == 0:
            best = t
    if best:
        return best
    # TODO(synk): pad ragged L to a tileable size instead of a full-length block.
    return n


# ---------------------------------------------------------------------------
# Public wrapper: matches the PyTorch module forward (mask=None, eval mode).
# ---------------------------------------------------------------------------
def multihead_attention(query, key, value, prepared, *, n_heads, mask=None):
    """query/key/value: (B, hid_dim, L).  Returns (B, hid_dim, L)."""
    if mask is not None:
        raise NotImplementedError("mask path not implemented (module default mask=None)")
    B, H, L = query.shape
    assert H % n_heads == 0
    assert key.shape == query.shape and value.shape == query.shape, \
        "cross-attention with different q/kv lengths not supported"  # TODO(synk)
    hd = H // n_heads
    out_dtype = query.dtype
    cdt = prepared["wq_t"].dtype

    vmem_limit, tile_target = _chip_budgets()
    TL = _pick_tile(L, tile_target)
    TQ = _pick_tile(L, tile_target)
    TK = _pick_tile(L, min(tile_target, 256))   # bound live (h, TQ, TK) score tiles

    # Keep K/V resident across q-tiles when they fit comfortably (constant kv
    # block index across qi -> Pallas skips the re-DMA).
    kv_bytes = 2 * 2 * n_heads * L * hd * jnp.dtype(cdt).itemsize   # K+V, double-buffered
    if L <= 1024 and kv_bytes <= vmem_limit // 4:
        TK = L

    # ---- Kernel 1: QKV projections (raw-layout in, head-major out) -------
    x_spec = pl.BlockSpec((1, H, TL), lambda b, l: (b, 0, l))
    # Constant-index weight/bias blocks (fetched once; bf16 halves their VMEM).
    # TODO(synk): single-buffer these constant blocks (pl.Buffered(1)) once the
    # pipeline_mode knob is available for top-level pallas_call block specs.
    w_spec = pl.BlockSpec((H, H), lambda b, l: (0, 0))
    b_spec = pl.BlockSpec((1, H), lambda b, l: (0, 0))
    qkv_spec = pl.BlockSpec((1, n_heads, TL, hd), lambda b, l: (b, 0, l, 0))

    qkv_kernel = functools.partial(_qkv_proj_kernel, n_heads=n_heads, head_dim=hd)

    q, k, v = pl.pallas_call(
        qkv_kernel,
        out_shape=(jax.ShapeDtypeStruct((B, n_heads, L, hd), cdt),
                   jax.ShapeDtypeStruct((B, n_heads, L, hd), cdt),
                   jax.ShapeDtypeStruct((B, n_heads, L, hd), cdt)),
        grid_spec=pltpu.PrefetchScalarGridSpec(
            num_scalar_prefetch=0,
            grid=(B, L // TL),
            in_specs=[x_spec, x_spec, x_spec,
                      w_spec, b_spec, w_spec, b_spec, w_spec, b_spec],
            out_specs=[qkv_spec, qkv_spec, qkv_spec],
        ),
        compiler_params=pltpu.CompilerParams(
            dimension_semantics=("parallel", "parallel"),
            vmem_limit_bytes=vmem_limit),
    )(query, key, value,
      prepared["wq_t"], prepared["bq"],
      prepared["wk_t"], prepared["bk"],
      prepared["wv_t"], prepared["bv"])

    # ---- Kernel 2: flash attention + output projection -------------------
    q_spec = pl.BlockSpec((1, n_heads, TQ, hd), lambda b, qi, ki: (b, 0, qi, 0))
    kv_spec = pl.BlockSpec((1, n_heads, TK, hd), lambda b, qi, ki: (b, 0, ki, 0))
    wf_spec = pl.BlockSpec((H, H), lambda b, qi, ki: (0, 0))
    bf_spec = pl.BlockSpec((H, 1), lambda b, qi, ki: (0, 0))
    o_spec = pl.BlockSpec((1, H, TQ), lambda b, qi, ki: (b, 0, qi))

    attn_kernel = functools.partial(_flash_attn_kernel, n_heads=n_heads, head_dim=hd)

    out = pl.pallas_call(
        attn_kernel,
        out_shape=jax.ShapeDtypeStruct((B, H, L), out_dtype),
        grid_spec=pltpu.PrefetchScalarGridSpec(
            num_scalar_prefetch=0,
            grid=(B, L // TQ, L // TK),
            in_specs=[q_spec, kv_spec, kv_spec, wf_spec, bf_spec],
            out_specs=o_spec,
            scratch_shapes=[
                pltpu.VMEM((n_heads, TQ, 1), jnp.float32),    # running max
                pltpu.VMEM((n_heads, TQ, 1), jnp.float32),    # running sum
                pltpu.VMEM((n_heads, TQ, hd), jnp.float32),   # output accumulator
                pltpu.VMEM((TQ, H), jnp.float32),             # head-packed context
            ]),
        compiler_params=pltpu.CompilerParams(
            dimension_semantics=("parallel", "parallel", "arbitrary"),
            vmem_limit_bytes=vmem_limit),
    )(q, k, v, prepared["wf"], prepared["bf_col"])

    return out   # already (B, hid_dim, L); no wrapper-side transpose


# ---------------------------------------------------------------------------
# Pure-JAX reference mirroring the PyTorch forward (mask=None, eval mode).
# ---------------------------------------------------------------------------
def _reference(query, key, value, params, *, n_heads):
    B, H, L = query.shape
    hd = H // n_heads
    scale = math.sqrt(hd)

    def lin(x, w, b):  # x: (B, L, H), w: (out, in)
        return jnp.einsum("blh,oh->blo", x, w) + b

    q = lin(jnp.transpose(query, (0, 2, 1)), params["wq"], params["bq"])
    k = lin(jnp.transpose(key, (0, 2, 1)), params["wk"], params["bk"])
    v = lin(jnp.transpose(value, (0, 2, 1)), params["wv"], params["bv"])

    def split(x):
        return jnp.transpose(x.reshape(B, L, n_heads, hd), (0, 2, 1, 3))

    Q, K, V = split(q), split(k), split(v)
    att = jnp.einsum("bhqd,bhkd->bhqk", Q, K) / scale
    att = jax.nn.softmax(att, axis=-1)
    x = jnp.einsum("bhqk,bhkd->bhqd", att, V)
    x = jnp.transpose(x, (0, 2, 1, 3)).reshape(B, L, H)
    x = jnp.einsum("blh,oh->blo", x, params["wf"]) + params["bf"]
    return jnp.transpose(x, (0, 2, 1))


def _init_params(key, hid_dim):
    """Deterministic PyTorch-Linear-style init: U(-1/sqrt(in), 1/sqrt(in))."""
    bound = 1.0 / math.sqrt(hid_dim)
    ks = jax.random.split(key, 8)
    u = lambda k, shape: jax.random.uniform(k, shape, jnp.float32, -bound, bound)
    return {
        "wq": u(ks[0], (hid_dim, hid_dim)), "bq": u(ks[1], (hid_dim,)),
        "wk": u(ks[2], (hid_dim, hid_dim)), "bk": u(ks[3], (hid_dim,)),
        "wv": u(ks[4], (hid_dim, hid_dim)), "bv": u(ks[5], (hid_dim,)),
        "wf": u(ks[6], (hid_dim, hid_dim)), "bf": u(ks[7], (hid_dim,)),
    }


if __name__ == "__main__":
    B, hid_dim, n_heads, L = 2, 32, 4, 8

    root = jax.random.PRNGKey(0)
    k_p, k_q, k_k, k_v = jax.random.split(root, 4)
    params = _init_params(k_p, hid_dim)

    # Module consumes (B, hid_dim, L) inputs (it transposes dims 1,2 itself).
    query = jax.random.normal(k_q, (B, hid_dim, L), jnp.float32)
    key = jax.random.normal(k_k, (B, hid_dim, L), jnp.float32)
    value = jax.random.normal(k_v, (B, hid_dim, L), jnp.float32)

    ref = _reference(query, key, value, params, n_heads=n_heads)

    # f32 compute path: tight check against the reference (approx reciprocal only).
    prepared_f32 = prepare_params(params, n_heads, compute_dtype=jnp.float32)
    out_f32 = jax.block_until_ready(
        multihead_attention(query, key, value, prepared_f32, n_heads=n_heads))
    assert out_f32.shape == (B, hid_dim, L)
    assert jnp.allclose(out_f32, ref, atol=2e-3, rtol=2e-3), "f32 path mismatch vs reference"

    # Default bf16 MXU path: looser tolerance (bf16 matmuls + bf16 q/k/v intermediates).
    prepared_bf16 = prepare_params(params, n_heads)
    out_bf16 = jax.block_until_ready(
        multihead_attention(query, key, value, prepared_bf16, n_heads=n_heads))
    assert out_bf16.shape == (B, hid_dim, L)
    assert jnp.allclose(out_bf16, ref, atol=5e-2, rtol=5e-2), "bf16 path mismatch vs reference"

    print("KERNEL_OK")
</pallas_src>

<mosaic_0001>
module attributes {stable_mosaic.version = 11 : i64} {
  func.func @_qkv_proj_kernel(%arg0: i32, %arg1: i32, %arg2: memref<1x32x8xf32, #tpu.memory_space<vmem>>, %arg3: memref<1x32x8xf32, #tpu.memory_space<vmem>>, %arg4: memref<1x32x8xf32, #tpu.memory_space<vmem>>, %arg5: memref<32x32xf32, #tpu.memory_space<vmem>>, %arg6: memref<1x32xf32, #tpu.memory_space<vmem>>, %arg7: memref<32x32xf32, #tpu.memory_space<vmem>>, %arg8: memref<1x32xf32, #tpu.memory_space<vmem>>, %arg9: memref<32x32xf32, #tpu.memory_space<vmem>>, %arg10: memref<1x32xf32, #tpu.memory_space<vmem>>, %arg11: memref<1x4x8x8xf32, #tpu.memory_space<vmem>>, %arg12: memref<1x4x8x8xf32, #tpu.memory_space<vmem>>, %arg13: memref<1x4x8x8xf32, #tpu.memory_space<vmem>>) attributes {dimension_semantics = [#tpu.dimension_semantics<parallel>, #tpu.dimension_semantics<parallel>], iteration_bounds = array<i64: 2, 1>, scalar_prefetch = 0 : i64, scratch_operands = 0 : i64, tpu.core_type = #tpu.core_type<tc>, window_params = [{transform_indices = @transform_0, window_bounds = array<i64: 1, 32, 8>}, {transform_indices = @transform_1, window_bounds = array<i64: 1, 32, 8>}, {transform_indices = @transform_2, window_bounds = array<i64: 1, 32, 8>}, {pipeline_mode = #tpu.pipeline_mode<synchronous>, transform_indices = @transform_3, window_bounds = array<i64: 32, 32>}, {pipeline_mode = #tpu.pipeline_mode<synchronous>, transform_indices = @transform_4, window_bounds = array<i64: 1, 32>}, {pipeline_mode = #tpu.pipeline_mode<synchronous>, transform_indices = @transform_5, window_bounds = array<i64: 32, 32>}, {pipeline_mode = #tpu.pipeline_mode<synchronous>, transform_indices = @transform_6, window_bounds = array<i64: 1, 32>}, {pipeline_mode = #tpu.pipeline_mode<synchronous>, transform_indices = @transform_7, window_bounds = array<i64: 32, 32>}, {pipeline_mode = #tpu.pipeline_mode<synchronous>, transform_indices = @transform_8, window_bounds = array<i64: 1, 32>}, {transform_indices = @transform_9, window_bounds = array<i64: 1, 4, 8, 8>}, {transform_indices = @transform_10, window_bounds = array<i64: 1, 4, 8, 8>}, {transform_indices = @transform_11, window_bounds = array<i64: 1, 4, 8, 8>}]} {
    %c0 = arith.constant 0 : index
    %c0_0 = arith.constant 0 : index
    %c0_1 = arith.constant 0 : index
    %0 = vector.load %arg2[%c0, %c0_0, %c0_1] : memref<1x32x8xf32, #tpu.memory_space<vmem>>, vector<1x32x8xf32>
    %1 = vector.shape_cast %0 : vector<1x32x8xf32> to vector<32x8xf32>
    %c0_2 = arith.constant 0 : index
    %c0_3 = arith.constant 0 : index
    %2 = vector.load %arg5[%c0_2, %c0_3] : memref<32x32xf32, #tpu.memory_space<vmem>>, vector<32x32xf32>
    %cst = arith.constant dense<0.000000e+00> : vector<8x32xf32>
    %3 = tpu.matmul %1, %2, %cst {dimension_numbers = #tpu.dot_dimension_numbers<[0], [0], [1], [1], [0, 1, 1, 1], [], []>} : vector<32x8xf32>, vector<32x32xf32>, vector<8x32xf32> -> vector<8x32xf32>
    %c0_4 = arith.constant 0 : index
    %c0_5 = arith.constant 0 : index
    %4 = vector.load %arg6[%c0_4, %c0_5] : memref<1x32xf32, #tpu.memory_space<vmem>>, vector<1x32xf32>
    %5 = vector.broadcast %4 : vector<1x32xf32> to vector<8x32xf32>
    %6 = arith.addf %3, %5 : vector<8x32xf32>
    %7 = vector.extract_strided_slice %6 {offsets = [0, 0], sizes = [8, 8], strides = [1, 1]} : vector<8x32xf32> to vector<8x8xf32>
    %c0_6 = arith.constant 0 : index
    %c0_7 = arith.constant 0 : index
    %c0_8 = arith.constant 0 : index
    %c0_9 = arith.constant 0 : index
    %8 = vector.load %arg11[%c0_6, %c0_7, %c0_8, %c0_9] : memref<1x4x8x8xf32, #tpu.memory_space<vmem>>, vector<1x1x8x8xf32>
    %9 = vector.shape_cast %8 : vector<1x1x8x8xf32> to vector<8x8xf32>
    %10 = vector.shape_cast %7 : vector<8x8xf32> to vector<1x1x8x8xf32>
    tpu.vector_store %arg11[%c0_6, %c0_7, %c0_8, %c0_9], %10 {strides = array<i32>} : memref<1x4x8x8xf32, #tpu.memory_space<vmem>>, vector<1x1x8x8xf32>,
    %11 = vector.extract_strided_slice %6 {offsets = [0, 8], sizes = [8, 8], strides = [1, 1]} : vector<8x32xf32> to vector<8x8xf32>
    %c0_10 = arith.constant 0 : index
    %c1 = arith.constant 1 : index
    %c0_11 = arith.constant 0 : index
    %c0_12 = arith.constant 0 : index
    %12 = vector.load %arg11[%c0_10, %c1, %c0_11, %c0_12] : memref<1x4x8x8xf32, #tpu.memory_space<vmem>>, vector<1x1x8x8xf32>
    %13 = vector.shape_cast %12 : vector<1x1x8x8xf32> to vector<8x8xf32>
    %14 = vector.shape_cast %11 : vector<8x8xf32> to vector<1x1x8x8xf32>
    tpu.vector_store %arg11[%c0_10, %c1, %c0_11, %c0_12], %14 {strides = array<i32>} : memref<1x4x8x8xf32, #tpu.memory_space<vmem>>, vector<1x1x8x8xf32>,
    %15 = vector.extract_strided_slice %6 {offsets = [0, 16], sizes = [8, 8], strides = [1, 1]} : vector<8x32xf32> to vector<8x8xf32>
    %c0_13 = arith.constant 0 : index
    %c2 = arith.constant 2 : index
    %c0_14 = arith.constant 0 : index
    %c0_15 = arith.constant 0 : index
    %16 = vector.load %arg11[%c0_13, %c2, %c0_14, %c0_15] : memref<1x4x8x8xf32, #tpu.memory_space<vmem>>, vector<1x1x8x8xf32>
    %17 = vector.shape_cast %16 : vector<1x1x8x8xf32> to vector<8x8xf32>
    %18 = vector.shape_cast %15 : vector<8x8xf32> to vector<1x1x8x8xf32>
    tpu.vector_store %arg11[%c0_13, %c2, %c0_14, %c0_15], %18 {strides = array<i32>} : memref<1x4x8x8xf32, #tpu.memory_space<vmem>>, vector<1x1x8x8xf32>,
    %19 = vector.extract_strided_slice %6 {offsets = [0, 24], sizes = [8, 8], strides = [1, 1]} : vector<8x32xf32> to vector<8x8xf32>
    %c0_16 = arith.constant 0 : index
    %c3 = arith.constant 3 : index
    %c0_17 = arith.constant 0 : index
    %c0_18 = arith.constant 0 : index
    %20 = vector.load %arg11[%c0_16, %c3, %c0_17, %c0_18] : memref<1x4x8x8xf32, #tpu.memory_space<vmem>>, vector<1x1x8x8xf32>
    %21 = vector.shape_cast %20 : vector<1x1x8x8xf32> to vector<8x8xf32>
    %22 = vector.shape_cast %19 : vector<8x8xf32> to vector<1x1x8x8xf32>
    tpu.vector_store %arg11[%c0_16, %c3, %c0_17, %c0_18], %22 {strides = array<i32>} : memref<1x4x8x8xf32, #tpu.memory_space<vmem>>, vector<1x1x8x8xf32>,
    %c0_19 = arith.constant 0 : index
    %c0_20 = arith.constant 0 : index
    %c0_21 = arith.constant 0 : index
    %23 = vector.load %arg3[%c0_19, %c0_20, %c0_21] : memref<1x32x8xf32, #tpu.memory_space<vmem>>, vector<1x32x8xf32>
    %24 = vector.shape_cast %23 : vector<1x32x8xf32> to vector<32x8xf32>
    %c0_22 = arith.constant 0 : index
    %c0_23 = arith.constant 0 : index
    %25 = vector.load %arg7[%c0_22, %c0_23] : memref<32x32xf32, #tpu.memory_space<vmem>>, vector<32x32xf32>
    %cst_24 = arith.constant dense<0.000000e+00> : vector<8x32xf32>
    %26 = tpu.matmul %24, %25, %cst_24 {dimension_numbers = #tpu.dot_dimension_numbers<[0], [0], [1], [1], [0, 1, 1, 1], [], []>} : vector<32x8xf32>, vector<32x32xf32>, vector<8x32xf32> -> vector<8x32xf32>
    %c0_25 = arith.constant 0 : index
    %c0_26 = arith.constant 0 : index
    %27 = vector.load %arg8[%c0_25, %c0_26] : memref<1x32xf32, #tpu.memory_space<vmem>>, vector<1x32xf32>
    %28 = vector.broadcast %27 : vector<1x32xf32> to vector<8x32xf32>
    %29 = arith.addf %26, %28 : vector<8x32xf32>
    %30 = vector.extract_strided_slice %29 {offsets = [0, 0], sizes = [8, 8], strides = [1, 1]} : vector<8x32xf32> to vector<8x8xf32>
    %c0_27 = arith.constant 0 : index
    %c0_28 = arith.constant 0 : index
    %c0_29 = arith.constant 0 : index
    %c0_30 = arith.constant 0 : index
    %31 = vector.load %arg12[%c0_27, %c0_28, %c0_29, %c0_30] : memref<1x4x8x8xf32, #tpu.memory_space<vmem>>, vector<1x1x8x8xf32>
    %32 = vector.shape_cast %31 : vector<1x1x8x8xf32> to vector<8x8xf32>
    %33 = vector.shape_cast %30 : vector<8x8xf32> to vector<1x1x8x8xf32>
    tpu.vector_store %arg12[%c0_27, %c0_28, %c0_29, %c0_30], %33 {strides = array<i32>} : memref<1x4x8x8xf32, #tpu.memory_space<vmem>>, vector<1x1x8x8xf32>,
    %34 = vector.extract_strided_slice %29 {offsets = [0, 8], sizes = [8, 8], strides = [1, 1]} : vector<8x32xf32> to vector<8x8xf32>
    %c0_31 = arith.constant 0 : index
    %c1_32 = arith.constant 1 : index
    %c0_33 = arith.constant 0 : index
    %c0_34 = arith.constant 0 : index
    %35 = vector.load %arg12[%c0_31, %c1_32, %c0_33, %c0_34] : memref<1x4x8x8xf32, #tpu.memory_space<vmem>>, vector<1x1x8x8xf32>
    %36 = vector.shape_cast %35 : vector<1x1x8x8xf32> to vector<8x8xf32>
    %37 = vector.shape_cast %34 : vector<8x8xf32> to vector<1x1x8x8xf32>
    tpu.vector_store %arg12[%c0_31, %c1_32, %c0_33, %c0_34], %37 {strides = array<i32>} : memref<1x4x8x8xf32, #tpu.memory_space<vmem>>, vector<1x1x8x8xf32>,
    %38 = vector.extract_strided_slice %29 {offsets = [0, 16], sizes = [8, 8], strides = [1, 1]} : vector<8x32xf32> to vector<8x8xf32>
    %c0_35 = arith.constant 0 : index
    %c2_36 = arith.constant 2 : index
    %c0_37 = arith.constant 0 : index
    %c0_38 = arith.constant 0 : index
    %39 = vector.load %arg12[%c0_35, %c2_36, %c0_37, %c0_38] : memref<1x4x8x8xf32, #tpu.memory_space<vmem>>, vector<1x1x8x8xf32>
    %40 = vector.shape_cast %39 : vector<1x1x8x8xf32> to vector<8x8xf32>
    %41 = vector.shape_cast %38 : vector<8x8xf32> to vector<1x1x8x8xf32>
    tpu.vector_store %arg12[%c0_35, %c2_36, %c0_37, %c0_38], %41 {strides = array<i32>} : memref<1x4x8x8xf32, #tpu.memory_space<vmem>>, vector<1x1x8x8xf32>,
    %42 = vector.extract_strided_slice %29 {offsets = [0, 24], sizes = [8, 8], strides = [1, 1]} : vector<8x32xf32> to vector<8x8xf32>
    %c0_39 = arith.constant 0 : index
    %c3_40 = arith.constant 3 : index
    %c0_41 = arith.constant 0 : index
    %c0_42 = arith.constant 0 : index
    %43 = vector.load %arg12[%c0_39, %c3_40, %c0_41, %c0_42] : memref<1x4x8x8xf32, #tpu.memory_space<vmem>>, vector<1x1x8x8xf32>
    %44 = vector.shape_cast %43 : vector<1x1x8x8xf32> to vector<8x8xf32>
    %45 = vector.shape_cast %42 : vector<8x8xf32> to vector<1x1x8x8xf32>
    tpu.vector_store %arg12[%c0_39, %c3_40, %c0_41, %c0_42], %45 {strides = array<i32>} : memref<1x4x8x8xf32, #tpu.memory_space<vmem>>, vector<1x1x8x8xf32>,
    %c0_43 = arith.constant 0 : index
    %c0_44 = arith.constant 0 : index
    %c0_45 = arith.constant 0 : index
    %46 = vector.load %arg4[%c0_43, %c0_44, %c0_45] : memref<1x32x8xf32, #tpu.memory_space<vmem>>, vector<1x32x8xf32>
    %47 = vector.shape_cast %46 : vector<1x32x8xf32> to vector<32x8xf32>
    %c0_46 = arith.constant 0 : index
    %c0_47 = arith.constant 0 : index
    %48 = vector.load %arg9[%c0_46, %c0_47] : memref<32x32xf32, #tpu.memory_space<vmem>>, vector<32x32xf32>
    %cst_48 = arith.constant dense<0.000000e+00> : vector<8x32xf32>
    %49 = tpu.matmul %47, %48, %cst_48 {dimension_numbers = #tpu.dot_dimension_numbers<[0], [0], [1], [1], [0, 1, 1, 1], [], []>} : vector<32x8xf32>, vector<32x32xf32>, vector<8x32xf32> -> vector<8x32xf32>
    %c0_49 = arith.constant 0 : index
    %c0_50 = arith.constant 0 : index
    %50 = vector.load %arg10[%c0_49, %c0_50] : memref<1x32xf32, #tpu.memory_space<vmem>>, vector<1x32xf32>
    %51 = vector.broadcast %50 : vector<1x32xf32> to vector<8x32xf32>
    %52 = arith.addf %49, %51 : vector<8x32xf32>
    %53 = vector.extract_strided_slice %52 {offsets = [0, 0], sizes = [8, 8], strides = [1, 1]} : vector<8x32xf32> to vector<8x8xf32>
    %c0_51 = arith.constant 0 : index
    %c0_52 = arith.constant 0 : index
    %c0_53 = arith.constant 0 : index
    %c0_54 = arith.constant 0 : index
    %54 = vector.load %arg13[%c0_51, %c0_52, %c0_53, %c0_54] : memref<1x4x8x8xf32, #tpu.memory_space<vmem>>, vector<1x1x8x8xf32>
    %55 = vector.shape_cast %54 : vector<1x1x8x8xf32> to vector<8x8xf32>
    %56 = vector.shape_cast %53 : vector<8x8xf32> to vector<1x1x8x8xf32>
    tpu.vector_store %arg13[%c0_51, %c0_52, %c0_53, %c0_54], %56 {strides = array<i32>} : memref<1x4x8x8xf32, #tpu.memory_space<vmem>>, vector<1x1x8x8xf32>,
    %57 = vector.extract_strided_slice %52 {offsets = [0, 8], sizes = [8, 8], strides = [1, 1]} : vector<8x32xf32> to vector<8x8xf32>
    %c0_55 = arith.constant 0 : index
    %c1_56 = arith.constant 1 : index
    %c0_57 = arith.constant 0 : index
    %c0_58 = arith.constant 0 : index
    %58 = vector.load %arg13[%c0_55, %c1_56, %c0_57, %c0_58] : memref<1x4x8x8xf32, #tpu.memory_space<vmem>>, vector<1x1x8x8xf32>
    %59 = vector.shape_cast %58 : vector<1x1x8x8xf32> to vector<8x8xf32>
    %60 = vector.shape_cast %57 : vector<8x8xf32> to vector<1x1x8x8xf32>
    tpu.vector_store %arg13[%c0_55, %c1_56, %c0_57, %c0_58], %60 {strides = array<i32>} : memref<1x4x8x8xf32, #tpu.memory_space<vmem>>, vector<1x1x8x8xf32>,
    %61 = vector.extract_strided_slice %52 {offsets = [0, 16], sizes = [8, 8], strides = [1, 1]} : vector<8x32xf32> to vector<8x8xf32>
    %c0_59 = arith.constant 0 : index
    %c2_60 = arith.constant 2 : index
    %c0_61 = arith.constant 0 : index
    %c0_62 = arith.constant 0 : index
    %62 = vector.load %arg13[%c0_59, %c2_60, %c0_61, %c0_62] : memref<1x4x8x8xf32, #tpu.memory_space<vmem>>, vector<1x1x8x8xf32>
    %63 = vector.shape_cast %62 : vector<1x1x8x8xf32> to vector<8x8xf32>
    %64 = vector.shape_cast %61 : vector<8x8xf32> to vector<1x1x8x8xf32>
    tpu.vector_store %arg13[%c0_59, %c2_60, %c0_61, %c0_62], %64 {strides = array<i32>} : memref<1x4x8x8xf32, #tpu.memory_space<vmem>>, vector<1x1x8x8xf32>,
    %65 = vector.extract_strided_slice %52 {offsets = [0, 24], sizes = [8, 8], strides = [1, 1]} : vector<8x32xf32> to vector<8x8xf32>
    %c0_63 = arith.constant 0 : index
    %c3_64 = arith.constant 3 : index
    %c0_65 = arith.constant 0 : index
    %c0_66 = arith.constant 0 : index
    %66 = vector.load %arg13[%c0_63, %c3_64, %c0_65, %c0_66] : memref<1x4x8x8xf32, #tpu.memory_space<vmem>>, vector<1x1x8x8xf32>
    %67 = vector.shape_cast %66 : vector<1x1x8x8xf32> to vector<8x8xf32>
    %68 = vector.shape_cast %65 : vector<8x8xf32> to vector<1x1x8x8xf32>
    tpu.vector_store %arg13[%c0_63, %c3_64, %c0_65, %c0_66], %68 {strides = array<i32>} : memref<1x4x8x8xf32, #tpu.memory_space<vmem>>, vector<1x1x8x8xf32>,
    return
  }
  func.func @transform_0(%arg0: i32, %arg1: i32) -> (i32, i32, i32) {
    %c0_i32 = arith.constant 0 : i32
    %c0_i32_0 = arith.constant 0 : i32
    return %arg0, %c0_i32, %arg1 : i32, i32, i32
  }
  func.func @transform_1(%arg0: i32, %arg1: i32) -> (i32, i32, i32) {
    %c0_i32 = arith.constant 0 : i32
    %c0_i32_0 = arith.constant 0 : i32
    return %arg0, %c0_i32, %arg1 : i32, i32, i32
  }
  func.func @transform_2(%arg0: i32, %arg1: i32) -> (i32, i32, i32) {
    %c0_i32 = arith.constant 0 : i32
    %c0_i32_0 = arith.constant 0 : i32
    return %arg0, %c0_i32, %arg1 : i32, i32, i32
  }
  func.func @transform_3(%arg0: i32, %arg1: i32) -> (i32, i32) {
    %c0_i32 = arith.constant 0 : i32
    %c0_i32_0 = arith.constant 0 : i32
    %c0_i32_1 = arith.constant 0 : i32
    return %c0_i32, %c0_i32_0 : i32, i32
  }
  func.func @transform_4(%arg0: i32, %arg1: i32) -> (i32, i32) {
    %c0_i32 = arith.constant 0 : i32
    %c0_i32_0 = arith.constant 0 : i32
    %c0_i32_1 = arith.constant 0 : i32
    return %c0_i32, %c0_i32_0 : i32, i32
  }
  func.func @transform_5(%arg0: i32, %arg1: i32) -> (i32, i32) {
    %c0_i32 = arith.constant 0 : i32
    %c0_i32_0 = arith.constant 0 : i32
    %c0_i32_1 = arith.constant 0 : i32
    return %c0_i32, %c0_i32_0 : i32, i32
  }
  func.func @transform_6(%arg0: i32, %arg1: i32) -> (i32, i32) {
    %c0_i32 = arith.constant 0 : i32
    %c0_i32_0 = arith.constant 0 : i32
    %c0_i32_1 = arith.constant 0 : i32
    return %c0_i32, %c0_i32_0 : i32, i32
  }
  func.func @transform_7(%arg0: i32, %arg1: i32) -> (i32, i32) {
    %c0_i32 = arith.constant 0 : i32
    %c0_i32_0 = arith.constant 0 : i32
    %c0_i32_1 = arith.constant 0 : i32
    return %c0_i32, %c0_i32_0 : i32, i32
  }
  func.func @transform_8(%arg0: i32, %arg1: i32) -> (i32, i32) {
    %c0_i32 = arith.constant 0 : i32
    %c0_i32_0 = arith.constant 0 : i32
    %c0_i32_1 = arith.constant 0 : i32
    return %c0_i32, %c0_i32_0 : i32, i32
  }
  func.func @transform_9(%arg0: i32, %arg1: i32) -> (i32, i32, i32, i32) {
    %c0_i32 = arith.constant 0 : i32
    %c0_i32_0 = arith.constant 0 : i32
    %c0_i32_1 = arith.constant 0 : i32
    return %arg0, %c0_i32, %arg1, %c0_i32_0 : i32, i32, i32, i32
  }
  func.func @transform_10(%arg0: i32, %arg1: i32) -> (i32, i32, i32, i32) {
    %c0_i32 = arith.constant 0 : i32
    %c0_i32_0 = arith.constant 0 : i32
    %c0_i32_1 = arith.constant 0 : i32
    return %arg0, %c0_i32, %arg1, %c0_i32_0 : i32, i32, i32, i32
  }
  func.func @transform_11(%arg0: i32, %arg1: i32) -> (i32, i32, i32, i32) {
    %c0_i32 = arith.constant 0 : i32
    %c0_i32_0 = arith.constant 0 : i32
    %c0_i32_1 = arith.constant 0 : i32
    return %arg0, %c0_i32, %arg1, %c0_i32_0 : i32, i32, i32, i32
  }
}

</mosaic_0001>

<bundles_post_ra>
// kernel: tpu_custom_call.1
= control target key start
LH: loop header
LB: loop body
LE: loop exit
PB: predicated region body
PF: predicated region fallthrough
CT: control target
= control target key end

     0   :  { %s1836_s0 = inlined_call_operand.vmem [shape: f32[2,32,8], index: 0, kind: input, shape index: {}]   ;;  %s1837_s1 = inlined_call_operand.vmem [shape: f32[2,32,8], index: 1, kind: input, shape index: {}]   ;;  %s1838_s2 = inlined_call_operand.vmem [shape: f32[2,32,8], index: 2, kind: input, shape index: {}]   ;;  %s1839_s3 = inlined_call_operand.vmem [shape: f32[32,32], index: 3, kind: input, shape index: {}]   ;;  %s1840_s4 = inlined_call_operand.vmem [shape: f32[1,32], index: 4, kind: input, shape index: {}]   ;;  %s1841_s5 = inlined_call_operand.vmem [shape: f32[32,32], index: 5, kind: input, shape index: {}]   ;;  %s1842_s6 = inlined_call_operand.vmem [shape: f32[1,32], index: 6, kind: input, shape index: {}]   ;;  %s1843_s7 = inlined_call_operand.vmem [shape: f32[32,32], index: 7, kind: input, shape index: {}]   ;;  %s1844_s8 = inlined_call_operand.vmem [shape: f32[1,32], index: 8, kind: input, shape index: {}]   ;;  %s1845_s9 = inlined_call_operand.hbm [shape: f32[2,4,8,8], index: 9, kind: output, shape index: {0}]   ;;  %s1846_s10 = inlined_call_operand.hbm [shape: f32[2,4,8,8], index: 10, kind: output, shape index: {1}]   ;;  %s1847_s11 = inlined_call_operand.hbm [shape: f32[2,4,8,8], index: 11, kind: output, shape index: {2}]  }
   0x1   :  { %1853 = sst [smem:[#allocation10_spill]] %s1836_s0 }
   0x2   :  { %1854 = sst [smem:[#allocation11_spill]] %s1837_s1 }
   0x3   :  { %1855 = sst [smem:[#allocation12_spill]] %s1839_s3 }
   0x4   :  { %17 = vsyncpa [#allocation3], 0 }
   0x5   :  { %19 = vsyncpa [#allocation3 + $0x1], 0 }
   0x6   :  { %20 = vsyncpa [#allocation5], 0 }
   0x7   :  { %22 = vsyncpa [#allocation5 + $0x1], 0  ;;  %s1541_s17 = smov 0   ;;  %s1543_s18 = smov 0  }
   0x8   :  { %s1545_s19 = smov 0   ;;  %s1547_s20 = smov 0  }
   0x9   :  { %s1549_s21 = smov 0   ;;  %s1551_s22 = smov 0  }
   0xa LB: > { %s1849_s23 = sadd.s32 4294967295, %s1468_s22   ;;  %s1848_s24 = sadd.s32 4294967294, %s1468_s22   ;;  %s1468_s22 = sphi %s1551_s22, %s28_s22   ;;  %s1464_s21 = sphi %s1549_s21, %s1872_s21   ;;  %s1460_s20 = sphi %s1547_s20, %s1871_s20   ;;  %s1456_s19 = sphi %s1545_s19, %s1870_s19   ;;  %s1452_s18 = sphi %s1543_s18, %s1869_s18   ;;  %s1448_s17 = sphi %s1541_s17, %s1868_s17  }
   0xb   : > { %s40_s25 = sadd.s32 1, %s1464_s21  ;;  %s259_s26 = sadd.s32 1, %s1456_s19 }
   0xc   : > { %p42_p0 = scmp.ge.s32.totalorder %s40_s25, 2  ;;  %p269_p1 = scmp.ne.s32.totalorder %s1456_s19, %s1452_s18 }
   0xd   : > { %p270_p2 = scmp.eq.s32.totalorder %s1849_s23, 1  ;;  %p275_p3 = scmp.ne.s32.totalorder %s1452_s18, %s1448_s17 }
   0xe   : > { %s1874_s25 = smov (%p42_p0, %s40_s25), 0  ;;  %p276_p5 = scmp.eq.s32.totalorder %s1848_s24, 1 }
   0xf   : > { %1856 = sst [smem:[#allocation9_spill]] %s1874_s25  ;;  %p1583_p4 = por %p270_p2, %p269_p1 }
  0x10   : > { %s254_s28 = ssub.s32 %s1464_s21, %s1874_s25  ;;  %p1149_p6 = scmp.ge.s32.totalorder %s1468_s22, 1 }
  0x11   : > { %p257_p7 = scmp.eq.s32.totalorder %s254_s28, 0  ;;  %p1592_p8 = por %p276_p5, %p275_p3 }
  0x12   : > { %p401_p9 = scmp.lt.s32.totalorder %s1468_s22, 3 }
  0x13   : > { %s1598_s30 = scalar_select %p257_p7, %s1456_s19, %s259_s26  }
  0x14   : > { %p402_p10 = pnand %p1149_p6, %p401_p9 }
  0x15   : > { %p470_p11 = scmp.lt.s32.totalorder (!%p402_p10), %s1460_s20, 1  ;;  %s1859_s3 = sld [smem:[#allocation12_spill]] (!%p402_p10)  ;;  %v1470_v2 = vmov (!%p402_p10), 0.0|0.0   ;;  %vm1471_vm0 = vmmov (!%p402_p10), 0   ;;  %v1472_v6 = vmov (!%p402_p10), 0.0   ;;  %v637_v8 = vld [vmem:[%s1841_s5] sm:$0xff] (!%p402_p10) }
  0x16   : > { %405 = sbr.rel (%p402_p10) target bundleno = 560 (0x230), region = 56  ;;  %1239 = vmatprep.subr.bf16.mxu0 (!%p402_p10), %v1470_v2  ;;  %1245 = vmatprep.subr.bf16.mxu1 (!%p402_p10), %v1470_v2  ;;  %s1860_s0 = sld [smem:[#allocation10_spill]] (!%p402_p10)  ;;  %v638_v9 = vld [vmem:[%s1841_s5 + $0x8] sm:$0xff] (!%p402_p10)  ;;  %v639_v15 = vld [vmem:[%s1841_s5 + $0x10] sm:$0xff] (!%p402_p10)  ;;  %v640_v16 = vld [vmem:[%s1841_s5 + $0x18] sm:$0xff] (!%p402_p10)  ;;  %vm541_vm1 = vcmask (!%p402_p10), 261120  }
  0x17   : > { %1214 = vmatprep.mubr.msk.f32.mxu0 (!%p402_p10), %vm1471_vm0, %v1472_v6  ;;  %1225 = vmatprep.mubr.msk.f32.mxu1 (!%p402_p10), %vm1471_vm0, %v1472_v6  ;;  %s1861_s1 = sld [smem:[#allocation11_spill]] (!%p402_p10)  ;;  %v1246_v12 = vpack.c.bf16 (!%p402_p10), %v638_v9, %v637_v8  ;;  %v1249_v17 = vpack.c.bf16 (!%p402_p10), %v640_v16, %v639_v15  ;;  %v774_v26 = vld [vmem:[%s1843_s7] sm:$0xff] (!%p402_p10)  ;;  %v775_v27 = vld [vmem:[%s1843_s7 + $0x8] sm:$0xff] (!%p402_p10)  ;;  %v776_v29 = vld [vmem:[%s1843_s7 + $0x10] sm:$0xff] (!%p402_p10)  ;;  %s453_s24 = sand.u32 (!%p402_p10), 1, %s1452_s18   ;;  %vm615_vm2 = vcmask (!%p402_p10), 64512  }
  0x18   : > { %v1252_v28 = vpack.c.bf16 (!%p402_p10), %v775_v27, %v774_v26  ;;  %v777_v30 = vld [vmem:[%s1843_s7 + $0x18] sm:$0xff] (!%p402_p10)  ;;  %s1150_s16 = sshll.u32 (!%p402_p10), %s453_s24, 5  ;;  %v1159_v35 = vld [vmem:[%s1840_s4] ss:$0 sm:$0xff] (!%p402_p10)  ;;  %s1475_s14 = smov (!%p402_p10), 104  }
  0x19   : > { %1247 = vmatpush3.bf16.msra.mxu1 (!%p402_p10), %v1246_v12  ;;  %v1255_v33 = vpack.c.bf16 (!%p402_p10), %v777_v30, %v776_v29  ;;  %v1164_v36 = vld [vmem:[%s1842_s6] ss:$0 sm:$0xff] (!%p402_p10)  ;;  %s455_s23 = scalar_lea.vmem (!%p402_p10), [#allocation2], %s1150_s16  ;;  %s1671_s25 = scalar_lea.vmem (!%p402_p10), [#allocation4], %s1150_s16 }
  0x1a   : > { %1248 = vmatprep.subr.bf16.mxu1 (!%p402_p10), %v1470_v2  ;;  %v1169_v43 = vld [vmem:[%s1844_s8] ss:$0 sm:$0xff] (!%p402_p10) }
  0x1b   : > { %v498_v0 = vld [vmem:[%s1859_s3] sm:$0xff] (!%p402_p10)  ;;  %v499_v1 = vld [vmem:[%s1859_s3 + $0x8] sm:$0xff] (!%p402_p10)  ;;  %v500_v4 = vld [vmem:[%s1859_s3 + $0x10] sm:$0xff] (!%p402_p10) }
  0x1c   : > { %v1240_v3 = vpack.c.bf16 (!%p402_p10), %v499_v1, %v498_v0  ;;  %v501_v5 = vld [vmem:[%s1859_s3 + $0x18] sm:$0xff] (!%p402_p10)  ;;  %s1678_s3 = scalar_lea.vmem (!%p402_p10), [#allocation6], %s1150_s16 }
  0x1d   : > { %s471_s12 = scalar_select %p470_p11, %s1460_s20, 1  ;;  %v1243_v7 = vpack.c.bf16 %v501_v5, %v500_v4  ;;  %1250 = vmatpush3.bf16.msra.mxu1 %v1249_v17 }
  0x1e   : > { %1241 = vmatpush3.bf16.msra.mxu0 %v1240_v3 }
  0x1f   : > { %s1618_s13 = sshll.u32 %s471_s12, 5  ;;  %1242 = vmatprep.subr.bf16.mxu0 %v1470_v2 }
  0x20   : > { %s477_s15 = scalar_lea.vmem %s1860_s0, %s1618_s13  ;;  %s485_s28 = scalar_lea.vmem %s1861_s1, %s1618_s13 }
  0x21   : > { %v494_v10 = vld [vmem:[%s477_s15] sm:$0xff]  ;;  %v495_v13 = vld [vmem:[%s477_s15 + $0x8] sm:$0xff]  ;;  %v496_v18 = vld [vmem:[%s477_s15 + $0x10] sm:$0xff]  ;;  %s493_s26 = scalar_lea.vmem %s1838_s2, %s1618_s13  ;;  %s1474_s13 = smov 120  }
  0x22   : > { %v633_v11 = vld [vmem:[%s485_s28] sm:$0xff]  ;;  %509 = vxpose.xlu0.b32.start [1/4] (short) (narrow) %v494_v10, 8  ;;  %v634_v14 = vld [vmem:[%s485_s28 + $0x8] sm:$0xff]  ;;  %1244 = vmatpush3.bf16.msra.mxu0 %v1243_v7  ;;  %v635_v19 = vld [vmem:[%s485_s28 + $0x10] sm:$0xff] }
  0x23   : > { %648 = vxpose.xlu1.b32.start [1/4] (short) (narrow) %v633_v11, 8  ;;  %1251 = vmatprep.subr.bf16.mxu0 %v1470_v2  ;;  %v497_v20 = vld [vmem:[%s477_s15 + $0x18] sm:$0xff]  ;;  %v770_v22 = vld [vmem:[%s493_s26] sm:$0xff]  ;;  %v771_v23 = vld [vmem:[%s493_s26 + $0x8] sm:$0xff]  ;;  %s932_s15 = sshll.u32 %s455_s23, 4  ;;  %s1687_s15 = int_to_ptr.vmem [resolvable:$true] %s932_s15 }
  0x24   : > { %v636_v21 = vld [vmem:[%s485_s28 + $0x18] sm:$0xff]  ;;  %v772_v24 = vld [vmem:[%s493_s26 + $0x10] sm:$0xff]  ;;  %s1473_s28 = smov 112  }
  0x25   : > { %v773_v25 = vld [vmem:[%s493_s26 + $0x18] sm:$0xff]  ;;  %s1683_s26 = sshll.u32 %s1460_s20, 9  ;;  %s1698_s20 = scalar_lea.sflag [#allocation3], %s453_s24 }
  0x26   : > { %510 = vxpose.xlu0.b32.cont [2/4] (short) (narrow) %v495_v13, 8 }
  0x27   : > { %649 = vxpose.xlu1.b32.cont [2/4] (short) (narrow) %v634_v14, 8 }
  0x2a   : > { %511 = vxpose.xlu0.b32.cont [3/4] (short) (narrow) %v496_v18, 8 }
  0x2b   : > { %650 = vxpose.xlu1.b32.cont [3/4] (short) (narrow) %v635_v19, 8 }
  0x2e   : > { %512 = vxpose.xlu0.b32.end [4/4] (short) (narrow) %v497_v20, 8 }
  0x2f   : > { %651 = vxpose.xlu1.b32.end [4/4] (short) (narrow) %v636_v21, 8 }
  0x32   : > { %785 = vxpose.xlu0.b32.start [1/4] (short) (narrow) %v770_v22, 8 }
  0x36   : > { %786 = vxpose.xlu0.b32.cont [2/4] (short) (narrow) %v771_v23, 8 }
  0x3a   : > { %787 = vxpose.xlu0.b32.cont [3/4] (short) (narrow) %v772_v24, 8 }
  0x3e   : > { %788 = vxpose.xlu0.b32.end [4/4] (short) (narrow) %v773_v25, 8 }
  0xa2   : > { %v525_v31 = vpop.trf.xlu0 }
  0xa3   : > { %v664_v32 = vpop.trf.xlu1  ;;  %1215 = vmatmul.mubr.msk.f32.vlgmr.msra.gmra.mrb[0].mxu0 %vm541_vm1, %v525_v31 }
  0xa4   : > { %1226 = vmatmul.mubr.msk.f32.vlgmr.msra.gmra.mrb[0].mxu1 %vm541_vm1, %v664_v32  ;;  %1253 = vmatpush3.bf16.msra.mxu0 %v1252_v28 }
  0xa5   : > { %1236 = vmatprep.mubr.msk.f32.mxu0 %vm1471_vm0, %v1472_v6  ;;  %1254 = vmatprep.subr.bf16.mxu0 %v1470_v2 }
  0xa8   : > { %1256 = vmatpush3.bf16.msra.mxu0 %v1255_v33 }
  0xb2   : > { %v801_v34 = vpop.trf.xlu0 }
  0xb3   : > { %1237 = vmatmul.mubr.msk.f32.vlgmr.msra.gmra.mrb[2].mxu0 %vm541_vm1, %v801_v34 }
 0x176   : > { %v611_v37 = vpop.f32.mrb[0].mxu0 }
 0x177   : > { %v749_v38 = vpop.f32.mrb[0].mxu1  ;;  %v612_v39 = vadd.f32 %v1159_v35, %v611_v37  ;;  %v1216_v40 = vpop.f32.mrb[1].mxu0 }
 0x178   : > { %v750_v41 = vadd.f32 %v1164_v36, %v749_v38  ;;  %v1227_v42 = vpop.f32.mrb[1].mxu1 }
 0x179   : > { %623 = vrot.lane.b32.xlu0 %v612_v39, %s1473_s28  ;;  %618 = vrot.lane.b32.xlu1 %v612_v39, %s1474_s13  ;;  %616 = vst.msk [vmem:[%s455_s23] sm:$0xff] %vm615_vm2, %v612_v39 }
 0x17a   : > { %753 = vst.msk [vmem:[%s1671_s25] sm:$0xff] %vm615_vm2, %v750_v41 }
 0x17d   : > { %628 = vrot.lane.b32.xlu1 %v612_v39, %s1475_s14 }
 0x181   : > { %755 = vrot.lane.b32.xlu1 %v750_v41, %s1474_s13 }
 0x185   : > { %760 = vrot.lane.b32.xlu1 %v750_v41, %s1473_s28 }
 0x186   : > { %v886_v44 = vpop.f32.mrb[2].mxu0 }
 0x187   : > { %v887_v45 = vadd.f32 %v1169_v43, %v886_v44  ;;  %v1238_v46 = vpop.f32.mrb[3].mxu0 }
 0x189   : > { %765 = vrot.lane.b32.xlu1 %v750_v41, %s1475_s14  ;;  %890 = vst.msk [vmem:[%s1678_s3] sm:$0xff] %vm615_vm2, %v887_v45 }
 0x18d   : > { %892 = vrot.lane.b32.xlu1 %v887_v45, %s1474_s13  ;;  %s1330_s13 = scalar_lea.vmem %s1687_s15, 512 }
 0x18e   : > { %p1331_p12 = scmp.ne.s32.totalorder %s1687_s15, %s1330_s13 }
 0x190   : > { %p1332_p13 = pnand %p1331_p12, %p1583_p4 }
 0x191   : > { %897 = vrot.lane.b32.xlu1 %v887_v45, %s1473_s28  ;;  %s1693_s28 = scalar_lea.hbm %s1845_s9, %s1683_s26 }
 0x192   : > { %p1333_p0 = pneg %p1332_p13 }
 0x195   : > { %902 = vrot.lane.b32.xlu1 %v887_v45, %s1475_s14  ;;  %s1476_s14 = smov [#allocation2]  }
 0x196   : > { %s1334_s0 = sshll.u32 %s1476_s14, 4  ;;  %s1335_s0 = int_to_ptr.vmem [resolvable:$false] %s1334_s0 }
 0x197   : > { %s1336_s16 = scalar_lea.vmem %s1335_s0, 1024  ;;  %p1337_p1 = scmp.lt.s32.totalorder %s1687_s15, %s1335_s0 }
 0x198   : > { %p1338_p2 = scmp.lt.s32.totalorder %s1336_s16, %s1330_s13 }
 0x19a   : > { %p1339_p3 = por %p1338_p2, %p1337_p1 }
 0x19c   : > { %p1340_p5 = pnand %p1339_p3, %p1333_p0 }
 0x1eb   : > { %v619_v47 = vpop.permute.xlu1 %618  ;;  %v624_v48 = vpop.permute.xlu0 %623 }
 0x1ec   : > { %1161 = vst.msk [vmem:[%s455_s23 + $0x8] sm:$0xff] %vm615_vm2, %v619_v47  ;;  %1162 = vst.msk [vmem:[%s455_s23 + $0x10] sm:$0xff] %vm615_vm2, %v624_v48 }
 0x1ef   : > { %v629_v49 = vpop.permute.xlu1 %628 }
 0x1f0   : > { %1163 = vst.msk [vmem:[%s455_s23 + $0x18] sm:$0xff] %vm615_vm2, %v629_v49 }
 0x1f1   : > { %1343 = shalt.err (!%p1340_p5)
}
 0x1f2   : > { %s1344_s24 = scalar_lea.hbm %s1693_s28, 512  ;;  %s1348_s14 = scalar_lea.hbm %s1845_s9, 1024 }
 0x1f3   : > { %p1345_p6 = scmp.ne.s32.totalorder %s1693_s28, %s1344_s24  ;;  %p1349_p10 = scmp.lt.u32.totalorder %s1693_s28, %s1845_s9 }
 0x1f4   : > { %p1350_p11 = scmp.lt.u32.totalorder %s1348_s14, %s1344_s24  ;;  %p1352_p13 = scmp.lt.u32.totalorder %s1344_s24, %s1693_s28 }
 0x1f5   : > { %p1346_p7 = pnand %p1345_p6, %p1583_p4 }
 0x1f6   : > { %p1351_p12 = por %p1350_p11, %p1349_p10 }
 0x1f7   : > { %p1347_p9 = pneg %p1346_p7 }
 0x1f8   : > { %p1353_p0 = por %p1352_p13, %p1351_p12 }
 0x1fa   : > { %p1354_p1 = pnand %p1353_p0, %p1347_p9 }
 0x1fc   : > { %1357 = shalt.err (!%p1354_p1)
}
 0x1fd   : > { %s1851_s13 = smov 128   ;;  %s1478_s1 = smov 8   ;;  %v756_v50 = vpop.permute.xlu1 %755 }
 0x1fe   : > { %1257 = dma.vmem_to_hbm [thread:$0]  (%p1583_p4), %s1687_s15, 512, %s1693_s28, %s1698_s20, %s1851_s13, %s1851_s13, %s1478_s1  }
 0x1ff   : > { %1166 = vst.msk [vmem:[%s1671_s25 + $0x8] sm:$0xff] %vm615_vm2, %v756_v50  ;;  %s949_s16 = sshll.u32 %s1671_s25, 4  ;;  %s1862_s24 = sadd.s32 4294967295, %s1468_s22   ;;  %s1734_s16 = int_to_ptr.vmem [resolvable:$true] %s949_s16 }
 0x200   : > { %s1730_s23 = sand.u32 1, %s1862_s24   ;;  %s1740_s15 = scalar_lea.hbm %s1846_s10, %s1683_s26 }
 0x201   : > { %v761_v51 = vpop.permute.xlu1 %760  ;;  %s1358_s20 = scalar_lea.vmem %s1734_s16, 512  ;;  %s1479_s0 = smov [#allocation4]  }
 0x202   : > { %1167 = vst.msk [vmem:[%s1671_s25 + $0x10] sm:$0xff] %vm615_vm2, %v761_v51  ;;  %p1359_p2 = scmp.ne.s32.totalorder %s1734_s16, %s1358_s20  ;;  %s1362_s24 = sshll.u32 %s1479_s0, 4  ;;  %s1363_s24 = int_to_ptr.vmem [resolvable:$false] %s1362_s24 }
 0x203   : > { %s1364_s13 = scalar_lea.vmem %s1363_s24, 1024  ;;  %p1365_p6 = scmp.lt.s32.totalorder %s1734_s16, %s1363_s24 }
 0x204   : > { %p1360_p3 = pnand %p1359_p2, %p1583_p4  ;;  %p1366_p7 = scmp.lt.s32.totalorder %s1364_s13, %s1358_s20 }
 0x205   : > { %v766_v52 = vpop.permute.xlu1 %765 }
 0x206   : > { %1168 = vst.msk [vmem:[%s1671_s25 + $0x18] sm:$0xff] %vm615_vm2, %v766_v52  ;;  %p1361_p5 = pneg %p1360_p3  ;;  %p1367_p9 = por %p1366_p7, %p1365_p6 }
 0x208   : > { %p1368_p10 = pnand %p1367_p9, %p1361_p5 }
 0x20a   : > { %1371 = shalt.err (!%p1368_p10)
}
 0x20b   : > { %s1372_s25 = scalar_lea.hbm %s1740_s15, 512  ;;  %s1376_s0 = scalar_lea.hbm %s1846_s10, 1024 }
 0x20c   : > { %p1373_p11 = scmp.ne.s32.totalorder %s1740_s15, %s1372_s25  ;;  %p1377_p0 = scmp.lt.u32.totalorder %s1740_s15, %s1846_s10 }
 0x20d   : > { %p1378_p1 = scmp.lt.u32.totalorder %s1376_s0, %s1372_s25  ;;  %p1380_p3 = scmp.lt.u32.totalorder %s1372_s25, %s1740_s15 }
 0x20e   : > { %p1374_p12 = pnand %p1373_p11, %p1583_p4 }
 0x20f   : > { %p1379_p2 = por %p1378_p1, %p1377_p0 }
 0x210   : > { %p1375_p13 = pneg %p1374_p12 }
 0x211   : > { %p1381_p5 = por %p1380_p3, %p1379_p2 }
 0x213   : > { %p1382_p6 = pnand %p1381_p5, %p1375_p13 }
 0x215   : > { %1385 = shalt.err (!%p1382_p6)
}
 0x216   : > { %s1863_s13 = smov 128   ;;  %s1864_s20 = scalar_lea.sflag [#allocation5], %s1730_s23  ;;  %v893_v53 = vpop.permute.xlu1 %892 }
 0x217   : > { %1258 = dma.vmem_to_hbm [thread:$0]  (%p1583_p4), %s1734_s16, 512, %s1740_s15, %s1864_s20, %s1863_s13, %s1863_s13, %s1478_s1  }
 0x218   : > { %1171 = vst.msk [vmem:[%s1678_s3 + $0x8] sm:$0xff] %vm615_vm2, %v893_v53  ;;  %s966_s28 = sshll.u32 %s1678_s3, 4  ;;  %s1782_s14 = scalar_lea.hbm %s1847_s11, %s1683_s26  ;;  %s1776_s28 = int_to_ptr.vmem [resolvable:$true] %s966_s28 }
 0x219   : > { %s1386_s16 = scalar_lea.vmem %s1776_s28, 512  ;;  %s1480_s15 = smov [#allocation6]  }
 0x21a   : > { %v898_v54 = vpop.permute.xlu1 %897  ;;  %p1387_p7 = scmp.ne.s32.totalorder %s1776_s28, %s1386_s16  ;;  %s1390_s0 = sshll.u32 %s1480_s15, 4  ;;  %s1391_s0 = int_to_ptr.vmem [resolvable:$false] %s1390_s0 }
 0x21b   : > { %1172 = vst.msk [vmem:[%s1678_s3 + $0x10] sm:$0xff] %vm615_vm2, %v898_v54  ;;  %s1392_s24 = scalar_lea.vmem %s1391_s0, 1024  ;;  %p1393_p11 = scmp.lt.s32.totalorder %s1776_s28, %s1391_s0 }
 0x21c   : > { %p1388_p9 = pnand %p1387_p7, %p1583_p4  ;;  %p1394_p12 = scmp.lt.s32.totalorder %s1392_s24, %s1386_s16 }
 0x21e   : > { %v903_v55 = vpop.permute.xlu1 %902  ;;  %p1389_p10 = pneg %p1388_p9  ;;  %p1395_p13 = por %p1394_p12, %p1393_p11 }
 0x21f   : > { %1173 = vst.msk [vmem:[%s1678_s3 + $0x18] sm:$0xff] %vm615_vm2, %v903_v55 }
 0x220   : > { %p1396_p0 = pnand %p1395_p13, %p1389_p10 }
 0x222   : > { %1399 = shalt.err (!%p1396_p0)
}
 0x223   : > { %s1400_s3 = scalar_lea.hbm %s1782_s14, 512  ;;  %s1404_s25 = scalar_lea.hbm %s1847_s11, 1024 }
 0x224   : > { %p1401_p1 = scmp.ne.s32.totalorder %s1782_s14, %s1400_s3  ;;  %p1405_p5 = scmp.lt.u32.totalorder %s1782_s14, %s1847_s11 }
 0x225   : > { %p1406_p6 = scmp.lt.u32.totalorder %s1404_s25, %s1400_s3  ;;  %p1408_p9 = scmp.lt.u32.totalorder %s1400_s3, %s1782_s14 }
 0x226   : > { %p1402_p2 = pnand %p1401_p1, %p1583_p4 }
 0x227   : > { %p1407_p7 = por %p1406_p6, %p1405_p5 }
 0x228   : > { %p1403_p3 = pneg %p1402_p2 }
 0x229   : > { %p1409_p10 = por %p1408_p9, %p1407_p7 }
 0x22b   : > { %p1410_p11 = pnand %p1409_p10, %p1403_p3 }
 0x22d   : > { %1413 = shalt.err (!%p1410_p11)
}
 0x22e   : > { %s1865_s16 = scalar_lea.sflag [#allocation5], %s1730_s23 }
 0x22f   : > { %1259 = dma.vmem_to_hbm [thread:$0]  (%p1583_p4), %s1776_s28, 512, %s1782_s14, %s1865_s16, %s1863_s13, %s1863_s13, %s1478_s1  }
 0x230 PF: > { %p1273_p12 = scmp.ge.s32.totalorder %s1468_s22, 2  ;;  %s981_s0 = sand.u32 1, %s1448_s17  }
 0x231   : > { %s982_s24 = scalar_lea.sflag [#allocation3], %s981_s0 }
 0x232   : > { %p1264_p13 = pnand %p1273_p12, %p1592_p8 }
 0x234   : > { %1439 = dma.done.wait (!%p1264_p13), %s982_s24, 512  }
 0x235   : > { %1441 = vsyncadd (!%p1264_p13), %s982_s24, 4294966784  ;;  %s1866_s27 = sadd.s32 4294967294, %s1468_s22  }
 0x236   : > { %s990_s3 = sand.u32 1, %s1866_s27  }
 0x237   : > { %s991_s26 = scalar_lea.sflag [#allocation5], %s990_s3 }
 0x238   : > { %1443 = dma.done.wait (!%p1264_p13), %s991_s26, 1024  }
 0x239   : > { %1445 = vsyncadd (!%p1264_p13), %s991_s26, 4294966272  ;;  %s28_s22 = sadd.s32 1, %s1468_s22   ;;  %s1867_s1 = sld [smem:[#allocation9_spill]] }
 0x23a   : > { %p25_p4 = scmp.ge.s32.totalorder %s28_s22, 4   ;;  %s1868_s17 = smov %s1452_s18 }
 0x23b   : > { %s1869_s18 = smov %s1456_s19  ;;  %s1870_s19 = smov %s1598_s30 }
 0x23c   : > { %s1871_s20 = smov %s1464_s21  ;;  %27 = sbr.rel (!%p25_p4) target bundleno = 10 (0xa), region = 138 }
 0x23f   : > { %s1872_s21 = smov %s1867_s1 }
 0x243   :  { %1005 = vsyncpa [#allocation3], 1 }
 0x244   :  { %1007 = vsyncpa [#allocation3 + $0x1], 1 }
 0x245   :  { %1008 = vsyncpa [#allocation5], 1 }
 0x246   :  { %1010 = vsyncpa [#allocation5 + $0x1], 1 }

</bundles_post_ra>
